<compile_context>
chip_gen: v5e
topology: v5e:2x2
jax: 0.10.0
libtpu: 0.0.40
codegen_flags: <defaults>
</compile_context>

<pallas_src>
import functools
import math

import jax
import jax.numpy as jnp
from jax.experimental import pallas as pl
from jax.experimental.pallas import tpu as pltpu


# ---------------------------------------------------------------------------
# In-kernel helpers (pure jnp -> safe for Mosaic and interpret mode).
# ---------------------------------------------------------------------------
def _shift_down(x, fill):
    """Row t gets x[t-1]; row 0 gets `fill`.  x: (L, C)."""
    top = jnp.full((1, x.shape[-1]), fill, dtype=x.dtype)
    return jnp.concatenate([top, x[:-1, :]], axis=0)


def _shift_up(x, fill):
    """Row t gets x[t+1]; last row gets `fill`.  x: (L, C)."""
    bot = jnp.full((1, x.shape[-1]), fill, dtype=x.dtype)
    return jnp.concatenate([x[1:, :], bot], axis=0)


# ---------------------------------------------------------------------------
# K1: depthwise conv k=3, stride=2, 'same', depth_multiplier + BN + ReLU
# ---------------------------------------------------------------------------
def _dw_s2_bn_relu_kernel(xp_ref, w_ref, b_ref, o_ref, *, c_in):
    xp = xp_ref[...]                       # (Lh, 2C): [x[2t,:], x[2t+1,:]]
    x_even = xp[:, :c_in]                  # x[2t]
    x_odd = xp[:, c_in:]                   # x[2t+1]
    x_m1 = _shift_down(x_odd, 0.0)         # x[2t-1]  (zero 'same' padding)
    acc = jnp.dot(x_m1, w_ref[0], preferred_element_type=jnp.float32)
    acc = acc + jnp.dot(x_even, w_ref[1], preferred_element_type=jnp.float32)
    acc = acc + jnp.dot(x_odd, w_ref[2], preferred_element_type=jnp.float32)
    acc = acc + b_ref[...]
    o_ref[...] = jnp.maximum(acc, 0.0).astype(o_ref.dtype)


def depthwise_s2_bn_relu(x, w_taps, bias):
    """x: (B, L, C) -> (B, L//2, Cout).  w_taps: (3, C, Cout), bias: (1, Cout)."""
    B, L, C = x.shape
    assert L % 2 == 0
    Cout = w_taps.shape[-1]
    Lh = L // 2
    xp = x.reshape(B, Lh, 2 * C)           # free row-major view (even|odd lanes)
    return pl.pallas_call(
        functools.partial(_dw_s2_bn_relu_kernel, c_in=C),
        out_shape=jax.ShapeDtypeStruct((B, Lh, Cout), x.dtype),
        grid=(B,),
        in_specs=[
            pl.BlockSpec((None, Lh, 2 * C), lambda b: (b, 0, 0)),
            pl.BlockSpec((3, C, Cout), lambda b: (0, 0, 0)),
            pl.BlockSpec((1, Cout), lambda b: (0, 0)),
        ],
        out_specs=pl.BlockSpec((None, Lh, Cout), lambda b: (b, 0, 0)),
        compiler_params=pltpu.CompilerParams(dimension_semantics=("parallel",)),
    )(xp, w_taps, bias)


# ---------------------------------------------------------------------------
# K2: SeparableConv1d(x) + (ReLU(x)  or  BN(x))   [the paired residual add]
# ---------------------------------------------------------------------------
def _sep_plus_other_kernel(x_ref, dww_ref, dwb_ref, pww_ref, pwb_ref,
                           osc_ref, osh_ref, o_ref, *, other_relu):
    x = x_ref[...]                         # (L, C)
    w = dww_ref[...]                       # (3, C) depthwise taps
    x_m1 = _shift_down(x, 0.0)
    x_p1 = _shift_up(x, 0.0)
    d = x_m1 * w[0:1, :] + x * w[1:2, :] + x_p1 * w[2:3, :] + dwb_ref[...]
    y = jnp.dot(d, pww_ref[...], preferred_element_type=jnp.float32) + pwb_ref[...]
    other = x * osc_ref[...] + osh_ref[...]
    if other_relu:
        other = jnp.maximum(other, 0.0)
    o_ref[...] = (y + other).astype(o_ref.dtype)


def sep_plus_other(x, sep, o_scale, o_shift, *, other_relu):
    B, L, C = x.shape
    Cout = sep["pw_w"].shape[-1]
    assert Cout == C, "residual add requires matching channel counts"
    return pl.pallas_call(
        functools.partial(_sep_plus_other_kernel, other_relu=other_relu),
        out_shape=jax.ShapeDtypeStruct((B, L, Cout), x.dtype),
        grid=(B,),
        in_specs=[
            pl.BlockSpec((None, L, C), lambda b: (b, 0, 0)),
            pl.BlockSpec((3, C), lambda b: (0, 0)),
            pl.BlockSpec((1, C), lambda b: (0, 0)),
            pl.BlockSpec((C, Cout), lambda b: (0, 0)),
            pl.BlockSpec((1, Cout), lambda b: (0, 0)),
            pl.BlockSpec((1, C), lambda b: (0, 0)),
            pl.BlockSpec((1, C), lambda b: (0, 0)),
        ],
        out_specs=pl.BlockSpec((None, L, Cout), lambda b: (b, 0, 0)),
        compiler_params=pltpu.CompilerParams(dimension_semantics=("parallel",)),
    )(x, sep["dw_w"], sep["dw_b"], sep["pw_w"], sep["pw_b"], o_scale, o_shift)


# ---------------------------------------------------------------------------
# K3: BN(x) + ReLU(x)
# ---------------------------------------------------------------------------
def _bn_plus_relu_kernel(x_ref, sc_ref, sh_ref, o_ref):
    x = x_ref[...]
    o_ref[...] = (x * sc_ref[...] + sh_ref[...] + jnp.maximum(x, 0.0)).astype(o_ref.dtype)


def bn_plus_relu(x, scale, shift):
    B, L, C = x.shape
    return pl.pallas_call(
        _bn_plus_relu_kernel,
        out_shape=jax.ShapeDtypeStruct((B, L, C), x.dtype),
        grid=(B,),
        in_specs=[
            pl.BlockSpec((None, L, C), lambda b: (b, 0, 0)),
            pl.BlockSpec((1, C), lambda b: (0, 0)),
            pl.BlockSpec((1, C), lambda b: (0, 0)),
        ],
        out_specs=pl.BlockSpec((None, L, C), lambda b: (b, 0, 0)),
        compiler_params=pltpu.CompilerParams(dimension_semantics=("parallel",)),
    )(x, scale, shift)


# ---------------------------------------------------------------------------
# K4: MaxPool1d(3, stride=2, pad=1)(x) + Conv1d(1x1, stride=2)(x)
# ---------------------------------------------------------------------------
def _maxpool_plus_proj_kernel(xp_ref, w_ref, b_ref, o_ref, *, c_in):
    xp = xp_ref[...]                       # (Lh, 2C)
    x_even = xp[:, :c_in]
    x_odd = xp[:, c_in:]
    x_m1 = _shift_down(x_odd, -jnp.inf)    # -inf pad, exactly like torch MaxPool1d
    mp = jnp.maximum(jnp.maximum(x_m1, x_even), x_odd)
    proj = jnp.dot(x_even, w_ref[...], preferred_element_type=jnp.float32) + b_ref[...]
    o_ref[...] = (mp + proj).astype(o_ref.dtype)


def maxpool_plus_proj(x, w, b):
    B, L, C = x.shape
    assert L % 2 == 0
    Cout = w.shape[-1]
    assert Cout == C, "residual add requires matching channel counts"
    Lh = L // 2
    xp = x.reshape(B, Lh, 2 * C)
    return pl.pallas_call(
        functools.partial(_maxpool_plus_proj_kernel, c_in=C),
        out_shape=jax.ShapeDtypeStruct((B, Lh, Cout), x.dtype),
        grid=(B,),
        in_specs=[
            pl.BlockSpec((None, Lh, 2 * C), lambda b: (b, 0, 0)),
            pl.BlockSpec((C, Cout), lambda b: (0, 0)),
            pl.BlockSpec((1, Cout), lambda b: (0, 0)),
        ],
        out_specs=pl.BlockSpec((None, Lh, Cout), lambda b: (b, 0, 0)),
        compiler_params=pltpu.CompilerParams(dimension_semantics=("parallel",)),
    )(xp, w, b)


# ---------------------------------------------------------------------------
# Parameter preprocessing (pure JAX, one-time): torch-layout weights -> kernel
# ---------------------------------------------------------------------------
def _dw_taps(weight, dm):
    """(C*dm, 1, 3) torch depthwise weight -> (3, C, C*dm) tap matrices."""
    cdm = weight.shape[0]
    c = cdm // dm
    w = weight[:, 0, :]                                          # (C*dm, 3)
    sel = (jnp.arange(c)[:, None] == (jnp.arange(cdm)[None, :] // dm))
    sel = sel.astype(weight.dtype)                               # (C, C*dm)
    return sel[None, :, :] * jnp.transpose(w)[:, None, :]        # (3, C, C*dm)


def _fold_bn(bn, eps=1e-5):
    gamma, beta, mean, var = bn
    scale = gamma / jnp.sqrt(var + eps)
    shift = beta - mean * scale
    return scale, shift


def _to_kernel_params(raw, p):
    dm1 = p["entry_depth_multiplier1"]
    dm2 = p["entry_depth_multiplier2"]
    kp = {"seq": [], "blocks": []}
    for wname, bname, bnname, dm in (("dw1_w", "dw1_b", "bn1", dm1),
                                     ("dw2_w", "dw2_b", "bn2", dm2)):
        scale, shift = _fold_bn(raw[bnname])
        taps = _dw_taps(raw[wname], dm) * scale[None, None, :]
        bias = (raw[bname] * scale + shift)[None, :]
        kp["seq"].append({"w_taps": taps, "bias": bias})

    def _sep(d):
        return dict(dw_w=jnp.transpose(d["dw_w"][:, 0, :]),      # (3, C)
                    dw_b=d["dw_b"][None, :],                     # (1, C)
                    pw_w=jnp.transpose(d["pw_w"][:, :, 0]),      # (Cin, Cout)
                    pw_b=d["pw_b"][None, :])                     # (1, Cout)

    for blk in raw["blocks"]:
        sa, ta = _fold_bn(blk["bn_a"])
        sb, tb = _fold_bn(blk["bn_b"])
        kp["blocks"].append({
            "sep_a": _sep(blk["sep_a"]),
            "bn_a": (sa[None, :], ta[None, :]),
            "sep_b": _sep(blk["sep_b"]),
            "bn_b": (sb[None, :], tb[None, :]),
            "proj": (jnp.transpose(blk["proj"]["w"][:, :, 0]),
                     blk["proj"]["b"][None, :]),
        })
    return kp


# ---------------------------------------------------------------------------
# Full forward (mirrors _XceptionEntry.forward; note prev == x at every pair)
# ---------------------------------------------------------------------------
def xception_entry_forward(x_ncl, kp):
    """Pallas forward.  x_ncl: (B, C, L) PyTorch layout -> (B, C_out, L_out)."""
    x = jnp.transpose(x_ncl, (0, 2, 1))                # channels-last (B, L, C)
    for stage in kp["seq"]:                            # DW -> BN -> ReLU (x2)
        x = depthwise_s2_bn_relu(x, stage["w_taps"], stage["bias"])
    for blk in kp["blocks"]:
        C = x.shape[-1]
        ones = jnp.ones((1, C), jnp.float32)
        zeros = jnp.zeros((1, C), jnp.float32)
        # pair 0: main=ReLU(x), residual=SeparableConv_a(x)
        x = sep_plus_other(x, blk["sep_a"], ones, zeros, other_relu=True)
        # pair 1: main=BN_a(x), residual=ReLU(x)
        x = bn_plus_relu(x, blk["bn_a"][0], blk["bn_a"][1])
        # pair 2: main=SeparableConv_b(x), residual=BN_b(x)
        x = sep_plus_other(x, blk["sep_b"], blk["bn_b"][0], blk["bn_b"][1],
                           other_relu=False)
        # pair 3: main=MaxPool(x), residual=Conv1d(1x1, stride 2)(x)
        x = maxpool_plus_proj(x, blk["proj"][0], blk["proj"][1])
    return jnp.transpose(x, (0, 2, 1))


# ---------------------------------------------------------------------------
# Pure-JAX reference (lax.conv / reduce_window) for correctness checking
# ---------------------------------------------------------------------------
def _ref_depthwise(x, w, b, stride):
    y = jax.lax.conv_general_dilated(
        x, w, window_strides=(stride,), padding=[(1, 1)],
        dimension_numbers=("NCH", "OIH", "NCH"),
        feature_group_count=x.shape[1])
    return y + b[None, :, None]


def _ref_bn(x, bn, eps=1e-5):
    gamma, beta, mean, var = bn
    return ((x - mean[None, :, None]) / jnp.sqrt(var[None, :, None] + eps)
            * gamma[None, :, None] + beta[None, :, None])


def _ref_sep(x, d):
    y = _ref_depthwise(x, d["dw_w"], d["dw_b"], stride=1)
    return jnp.einsum("bcl,oc->bol", y, d["pw_w"][:, :, 0]) + d["pw_b"][None, :, None]


def _ref_maxpool(x):
    return jax.lax.reduce_window(x, -jnp.inf, jax.lax.max,
                                 window_dimensions=(1, 1, 3),
                                 window_strides=(1, 1, 2),
                                 padding=((0, 0), (0, 0), (1, 1)))


def _ref_proj(x, d):
    return jnp.einsum("bcl,oc->bol", x[:, :, ::2], d["w"][:, :, 0]) + d["b"][None, :, None]


def reference_forward(x, raw):
    y = _ref_depthwise(x, raw["dw1_w"], raw["dw1_b"], stride=2)
    y = jax.nn.relu(_ref_bn(y, raw["bn1"]))
    y = _ref_depthwise(y, raw["dw2_w"], raw["dw2_b"], stride=2)
    y = jax.nn.relu(_ref_bn(y, raw["bn2"]))
    prev = y
    blocks = []
    for blk in raw["blocks"]:
        blocks.extend([
            jax.nn.relu,
            functools.partial(_ref_sep, d=blk["sep_a"]),
            functools.partial(_ref_bn, bn=blk["bn_a"]),
            jax.nn.relu,
            functools.partial(_ref_sep, d=blk["sep_b"]),
            functools.partial(_ref_bn, bn=blk["bn_b"]),
            _ref_maxpool,
            functools.partial(_ref_proj, d=blk["proj"]),
        ])
    for i in range(0, len(blocks), 2):
        main = blocks[i](y)
        residual = blocks[i + 1](prev)
        y = main + residual
        prev = y
    return y


# ---------------------------------------------------------------------------
# Deterministic parameter init (torch-layout tensors)
# ---------------------------------------------------------------------------
def init_raw_params(key, in_ch, p):
    dm1, dm2 = p["entry_depth_multiplier1"], p["entry_depth_multiplier2"]
    sizes = p["entry_sizes"]
    keys = iter(jax.random.split(key, 64))

    def nrm(shape, scale):
        return (scale * jax.random.normal(next(keys), shape)).astype(jnp.float32)

    def bn(c):
        g = (1.0 + 0.1 * jax.random.normal(next(keys), (c,))).astype(jnp.float32)
        bta = (0.1 * jax.random.normal(next(keys), (c,))).astype(jnp.float32)
        mu = (0.1 * jax.random.normal(next(keys), (c,))).astype(jnp.float32)
        var = (1.0 + 0.2 * jax.random.uniform(next(keys), (c,))).astype(jnp.float32)
        return (g, bta, mu, var)

    raw = {}
    c0 = in_ch * dm1
    raw["dw1_w"], raw["dw1_b"], raw["bn1"] = nrm((c0, 1, 3), 0.4), nrm((c0,), 0.1), bn(c0)
    c1 = c0 * dm2
    raw["dw2_w"], raw["dw2_b"], raw["bn2"] = nrm((c1, 1, 3), 0.4), nrm((c1,), 0.1), bn(c1)

    blocks, cin = [], c1
    for size in sizes:
        blocks.append({
            "sep_a": dict(dw_w=nrm((cin, 1, 3), 0.4), dw_b=nrm((cin,), 0.1),
                          pw_w=nrm((size, cin, 1), 0.6 / math.sqrt(cin)),
                          pw_b=nrm((size,), 0.1)),
            "bn_a": bn(size),
            "sep_b": dict(dw_w=nrm((size, 1, 3), 0.4), dw_b=nrm((size,), 0.1),
                          pw_w=nrm((size, size, 1), 0.6 / math.sqrt(size)),
                          pw_b=nrm((size,), 0.1)),
            "bn_b": bn(size),
            "proj": dict(w=nrm((size, cin, 1), 0.6 / math.sqrt(cin)),
                         b=nrm((size,), 0.1)),
        })
        cin = size
    raw["blocks"] = blocks
    return raw


if __name__ == "__main__":
    B, in_ch, L = 2, 4, 64
    p = {
        "entry_kernel_size1": 3, "entry_depth_multiplier1": 2, "entry_strides1": 2,
        "entry_kernel_size2": 3, "entry_depth_multiplier2": 2, "entry_strides2": 2,
        # The module's forward adds main(x)+residual(x) whose channel counts
        # only match when every entry size equals in_ch*dm1*dm2 (16 here).
        "entry_sizes": [16, 16],
    }
    assert p["entry_kernel_size1"] == p["entry_kernel_size2"] == 3
    assert p["entry_strides1"] == p["entry_strides2"] == 2
    c0 = in_ch * p["entry_depth_multiplier1"] * p["entry_depth_multiplier2"]
    assert all(s == c0 for s in p["entry_sizes"])

    key = jax.random.PRNGKey(0)
    kx, kprm = jax.random.split(key)
    x = jax.random.normal(kx, (B, in_ch, L), dtype=jnp.float32)   # torch (N, C, L)

    raw = init_raw_params(kprm, in_ch, p)
    kparams = _to_kernel_params(raw, p)

    out = xception_entry_forward(x, kparams)
    out = jax.block_until_ready(out)

    ref = reference_forward(x, raw)
    assert out.shape == ref.shape == (B, c0, L // 16), (out.shape, ref.shape)
    max_err = float(jnp.max(jnp.abs(out - ref)))
    assert bool(jnp.allclose(out, ref, rtol=5e-2, atol=5e-2)), f"max abs err={max_err}"

    print("KERNEL_OK")
</pallas_src>

<mosaic_0001>
module attributes {stable_mosaic.version = 11 : i64} {
  func.func @_dw_s2_bn_relu_kernel(%arg0: i32, %arg1: memref<1x32x8xf32, #tpu.memory_space<vmem>>, %arg2: memref<3x4x8xf32, #tpu.memory_space<vmem>>, %arg3: memref<1x8xf32, #tpu.memory_space<vmem>>, %arg4: memref<1x32x8xf32, #tpu.memory_space<vmem>>) attributes {dimension_semantics = [#tpu.dimension_semantics<parallel>], iteration_bounds = array<i64: 2>, scalar_prefetch = 0 : i64, scratch_operands = 0 : i64, tpu.core_type = #tpu.core_type<tc>, window_params = [{transform_indices = @transform_0, window_bounds = array<i64: 1, 32, 8>}, {pipeline_mode = #tpu.pipeline_mode<synchronous>, transform_indices = @transform_1, window_bounds = array<i64: 3, 4, 8>}, {pipeline_mode = #tpu.pipeline_mode<synchronous>, transform_indices = @transform_2, window_bounds = array<i64: 1, 8>}, {transform_indices = @transform_3, window_bounds = array<i64: 1, 32, 8>}]} {
    %c0 = arith.constant 0 : index
    %c0_0 = arith.constant 0 : index
    %c0_1 = arith.constant 0 : index
    %0 = vector.load %arg1[%c0, %c0_0, %c0_1] : memref<1x32x8xf32, #tpu.memory_space<vmem>>, vector<1x32x8xf32>
    %1 = vector.shape_cast %0 : vector<1x32x8xf32> to vector<32x8xf32>
    %2 = vector.extract_strided_slice %1 {offsets = [0, 0], sizes = [32, 4], strides = [1, 1]} : vector<32x8xf32> to vector<32x4xf32>
    %3 = vector.extract_strided_slice %1 {offsets = [0, 4], sizes = [32, 4], strides = [1, 1]} : vector<32x8xf32> to vector<32x4xf32>
    %cst = arith.constant 0.000000e+00 : f32
    %4 = vector.broadcast %cst : f32 to vector<1x4xf32>
    %5 = vector.extract_strided_slice %3 {offsets = [0, 0], sizes = [31, 4], strides = [1, 1]} : vector<32x4xf32> to vector<31x4xf32>
    %6 = tpu.concatenate %4, %5 in 0 : vector<1x4xf32>, vector<31x4xf32> -> vector<32x4xf32>
    %c0_2 = arith.constant 0 : index
    %c0_3 = arith.constant 0 : index
    %c0_4 = arith.constant 0 : index
    %7 = vector.load %arg2[%c0_2, %c0_3, %c0_4] : memref<3x4x8xf32, #tpu.memory_space<vmem>>, vector<1x4x8xf32>
    %8 = vector.shape_cast %7 : vector<1x4x8xf32> to vector<4x8xf32>
    %cst_5 = arith.constant dense<0.000000e+00> : vector<32x8xf32>
    %9 = tpu.matmul %6, %8, %cst_5 {dimension_numbers = #tpu.dot_dimension_numbers<[1], [0], [0], [1], [0, 0, 1, 1], [], []>} : vector<32x4xf32>, vector<4x8xf32>, vector<32x8xf32> -> vector<32x8xf32>
    %c1 = arith.constant 1 : index
    %c0_6 = arith.constant 0 : index
    %c0_7 = arith.constant 0 : index
    %10 = vector.load %arg2[%c1, %c0_6, %c0_7] : memref<3x4x8xf32, #tpu.memory_space<vmem>>, vector<1x4x8xf32>
    %11 = vector.shape_cast %10 : vector<1x4x8xf32> to vector<4x8xf32>
    %cst_8 = arith.constant dense<0.000000e+00> : vector<32x8xf32>
    %12 = tpu.matmul %2, %11, %cst_8 {dimension_numbers = #tpu.dot_dimension_numbers<[1], [0], [0], [1], [0, 0, 1, 1], [], []>} : vector<32x4xf32>, vector<4x8xf32>, vector<32x8xf32> -> vector<32x8xf32>
    %13 = arith.addf %9, %12 : vector<32x8xf32>
    %c2 = arith.constant 2 : index
    %c0_9 = arith.constant 0 : index
    %c0_10 = arith.constant 0 : index
    %14 = vector.load %arg2[%c2, %c0_9, %c0_10] : memref<3x4x8xf32, #tpu.memory_space<vmem>>, vector<1x4x8xf32>
    %15 = vector.shape_cast %14 : vector<1x4x8xf32> to vector<4x8xf32>
    %cst_11 = arith.constant dense<0.000000e+00> : vector<32x8xf32>
    %16 = tpu.matmul %3, %15, %cst_11 {dimension_numbers = #tpu.dot_dimension_numbers<[1], [0], [0], [1], [0, 0, 1, 1], [], []>} : vector<32x4xf32>, vector<4x8xf32>, vector<32x8xf32> -> vector<32x8xf32>
    %17 = arith.addf %13, %16 : vector<32x8xf32>
    %c0_12 = arith.constant 0 : index
    %c0_13 = arith.constant 0 : index
    %18 = vector.load %arg3[%c0_12, %c0_13] : memref<1x8xf32, #tpu.memory_space<vmem>>, vector<1x8xf32>
    %19 = vector.broadcast %18 : vector<1x8xf32> to vector<32x8xf32>
    %20 = arith.addf %17, %19 : vector<32x8xf32>
    %cst_14 = arith.constant 0.000000e+00 : f32
    %21 = vector.broadcast %cst_14 : f32 to vector<32x8xf32>
    %22 = arith.maximumf %20, %21 : vector<32x8xf32>
    %c0_15 = arith.constant 0 : index
    %c0_16 = arith.constant 0 : index
    %c0_17 = arith.constant 0 : index
    %23 = vector.load %arg4[%c0_15, %c0_16, %c0_17] : memref<1x32x8xf32, #tpu.memory_space<vmem>>, vector<1x32x8xf32>
    %24 = vector.shape_cast %23 : vector<1x32x8xf32> to vector<32x8xf32>
    %25 = vector.shape_cast %22 : vector<32x8xf32> to vector<1x32x8xf32>
    tpu.vector_store %arg4[%c0_15, %c0_16, %c0_17], %25 {strides = array<i32>} : memref<1x32x8xf32, #tpu.memory_space<vmem>>, vector<1x32x8xf32>,
    return
  }
  func.func @transform_0(%arg0: i32) -> (i32, i32, i32) {
    %c0_i32 = arith.constant 0 : i32
    %c0_i32_0 = arith.constant 0 : i32
    %c0_i32_1 = arith.constant 0 : i32
    return %arg0, %c0_i32, %c0_i32_0 : i32, i32, i32
  }
  func.func @transform_1(%arg0: i32) -> (i32, i32, i32) {
    %c0_i32 = arith.constant 0 : i32
    %c0_i32_0 = arith.constant 0 : i32
    %c0_i32_1 = arith.constant 0 : i32
    %c0_i32_2 = arith.constant 0 : i32
    return %c0_i32, %c0_i32_0, %c0_i32_1 : i32, i32, i32
  }
  func.func @transform_2(%arg0: i32) -> (i32, i32) {
    %c0_i32 = arith.constant 0 : i32
    %c0_i32_0 = arith.constant 0 : i32
    %c0_i32_1 = arith.constant 0 : i32
    return %c0_i32, %c0_i32_0 : i32, i32
  }
  func.func @transform_3(%arg0: i32) -> (i32, i32, i32) {
    %c0_i32 = arith.constant 0 : i32
    %c0_i32_0 = arith.constant 0 : i32
    %c0_i32_1 = arith.constant 0 : i32
    return %arg0, %c0_i32, %c0_i32_0 : i32, i32, i32
  }
}

</mosaic_0001>

<bundles_post_ra>
// kernel: tpu_custom_call.1
= control target key start
LH: loop header
LB: loop body
LE: loop exit
PB: predicated region body
PF: predicated region fallthrough
CT: control target
= control target key end

     0   :  { %s481_s12 = smov 0   ;;  %s543_s0 = inlined_call_operand.vmem [shape: f32[2,32,8], index: 0, kind: input, shape index: {}]   ;;  %s544_s1 = inlined_call_operand.vmem [shape: f32[3,4,8], index: 1, kind: input, shape index: {}]   ;;  %s545_s2 = inlined_call_operand.vmem [shape: f32[1,8], index: 2, kind: input, shape index: {}]   ;;  %s546_s3 = inlined_call_operand.vmem [shape: f32[2,32,8], index: 3, kind: output, shape index: {}]  }
   0x1 LB: > { %s409_s13 = sadd.s32 4294967295, %s458_s12   ;;  %p413_p0 = scmp.ge.s32.totalorder %s458_s12, 1  ;;  %s458_s12 = sphi %s481_s12, %s13_s12  }
   0x2   : > { %p137_p1 = scmp.lt.s32.totalorder %s458_s12, 3 }
   0x4   : > { %p138_p2 = pnand %p413_p0, %p137_p1 }
   0x5   : > { %p161_p3 = scmp.lt.s32.totalorder (!%p138_p2), %s409_s13, 1  ;;  %s460_s22 = smov (!%p138_p2), 124  }
   0x6   : > { %141 = sbr.rel (%p138_p2) target bundleno = 289 (0x121), region = 32 }
   0xb   : > { %v418_v0 = vld [vmem:[%s544_s1 + $0x4] sm:$0xf]  ;;  %vm209_vm0 = vcmask 1043456   ;;  %v429_v1 = vld [vmem:[%s544_s1 + $0x8] sm:$0xf]  ;;  %s548_s13 = smov (!%p161_p3, %s409_s13), 1 }
   0xc   : > { %419 = vmatpush.msk.msra.mxu0 %vm209_vm0, %v418_v0  ;;  %439 = vmatpush.msk.msra.mxu3 %vm209_vm0, %v418_v0  ;;  %s437_s18 = sshll.u32 %s548_s13, 5  ;;  %vm179_vm1 = vcmask 1040384   ;;  %vm200_vm2 = vcmask 31744   ;;  %v197_v13 = vld [vmem:[%s544_s1] sm:$0xf]  ;;  %vm349_vm3 = vcmask 64512  }
   0xd   : > { %441 = vmatpush.msk.msra.mxu2 %vm209_vm0, %v429_v1  ;;  %s165_s21 = scalar_lea.vmem %s543_s0, %s437_s18  ;;  %440 = vmatpush.msk.msra.mxu1 %vm209_vm0, %v197_v13  ;;  %v451_v29 = vld [vmem:[%s545_s2] ss:$0 sm:$0xff]  ;;  %s170_s29 = scalar_lea.vmem %s546_s3, %s437_s18 }
   0xe   : > { %v173_v2 = vld [vmem:[%s165_s21 + $0x10] sm:$0xff]  ;;  %v172_v3 = vld [vmem:[%s165_s21 + $0x8] sm:$0xff]  ;;  %v171_v4 = vld [vmem:[%s165_s21] sm:$0xff]  ;;  %424 = vmatpush.msk.msrb.mxu0 %vm209_vm0, %v197_v13 }
   0xf   : > { %289 = vrot.lane.b32.xlu1 %v173_v2, %s460_s22  ;;  %287 = vrot.lane.b32.xlu0 %v172_v3, %s460_s22  ;;  %v180_v5 = vrot.slane %v171_v4, 7  ;;  %v183_v6 = vrot.slane %v173_v2, 7  ;;  %v181_v7 = vrot.slane %v172_v3, 7  ;;  %v174_v10 = vld [vmem:[%s165_s21 + $0x18] sm:$0xff] }
  0x10   : > { %v185_v11 = vrot.slane %v174_v10, 7  ;;  %420 = vmatmul.msk.f32.vlgmr.msra.gmra.mxu0 %vm200_vm2, %v171_v4  ;;  %421 = vmatmul.msk.f32.vlgmr.msra.gmra.mxu3 %vm200_vm2, %v172_v3 }
  0x11   : > { %187 = vrot.lane.b32.xlu2 %v180_v5, %s460_s22  ;;  %v184_v8 = vsel %vm179_vm1, %v181_v7, %v183_v6  ;;  %v182_v9 = vsel %vm179_vm1, %v180_v5, %v181_v7  ;;  %430 = vmatpush.msk.msra.mxu0 %vm209_vm0, %v429_v1 }
  0x12   : > { %v186_v12 = vsel %vm179_vm1, %v183_v6, %v185_v11 }
  0x17   : > { %191 = vrot.lane.b32.xlu1 %v184_v8, %s460_s22  ;;  %189 = vrot.lane.b32.xlu0 %v182_v9, %s460_s22 }
  0x18   : > { %422 = vmatmul.msk.f32.gmra.mxu3 %vm200_vm2, %v173_v2 }
  0x19   : > { %291 = vrot.lane.b32.xlu2 %v174_v10, %s460_s22 }
  0x1f   : > { %285 = vrot.lane.b32.xlu1 %v171_v4, %s460_s22  ;;  %193 = vrot.lane.b32.xlu0 %v186_v12, %s460_s22 }
  0x20   : > { %423 = vmatmul.msk.f32.gmra.mxu3 %vm200_vm2, %v174_v10 }
  0x6b   : > { %v188_v14 = vpop.permute.xlu2 %187 }
  0x6c   : > { %v196_v15 = vsel %vm179_vm1, 0.0, %v188_v14 }
  0x6d   : > { %425 = vmatmul.msk.f32.vlgmr.msrb.gmra.mxu0 %vm200_vm2, %v196_v15 }
  0x73   : > { %v292_v20 = vpop.permute.xlu2 %291 }
  0x81   : > { %v290_v16 = vpop.permute.xlu1 %289  ;;  %v288_v17 = vpop.permute.xlu0 %287 }
  0x82   : > { %432 = vmatmul.msk.f32.vlgmr.msra.gmra.mxu2 %vm200_vm2, %v288_v17 }
  0x89   : > { %v192_v18 = vpop.permute.xlu1 %191  ;;  %v190_v19 = vpop.permute.xlu0 %189 }
  0x8a   : > { %426 = vmatmul.msk.f32.vlgmr.msra.gmra.mxu1 %vm200_vm2, %v190_v19  ;;  %433 = vmatmul.msk.f32.gmra.mxu2 %vm200_vm2, %v290_v16 }
  0x8d   : > { %v230_v23 = vpop.f32.mrf.mxu0 }
  0x91   : > { %v286_v21 = vpop.permute.xlu1 %285  ;;  %v194_v22 = vpop.permute.xlu0 %193 }
  0x92   : > { %427 = vmatmul.msk.f32.gmra.mxu1 %vm200_vm2, %v192_v18  ;;  %431 = vmatmul.msk.f32.vlgmr.msra.gmra.mxu0 %vm200_vm2, %v286_v21 }
  0x93   : > { %434 = vmatmul.msk.f32.gmra.mxu2 %vm200_vm2, %v292_v20  ;;  %v233_v24 = vpop.f32.mrf.mxu3 }
  0x9a   : > { %428 = vmatmul.msk.f32.gmra.mxu1 %vm200_vm2, %v194_v22 }
  0x9b   : > { %v236_v31 = vpop.f32.mrf.mxu3 }
  0xa3   : > { %v239_v44 = vpop.f32.mrf.mxu3 }
  0xea   : > { %v271_v26 = vpop.f32.mrf.mxu0 }
  0xeb   : > { %v272_v33 = vadd.f32 %v271_v26, %v230_v23 }
 0x105   : > { %v324_v25 = vpop.f32.mrf.mxu2 }
 0x107   : > { %v274_v27 = vpop.f32.mrf.mxu1 }
 0x108   : > { %v275_v28 = vadd.f32 %v274_v27, %v233_v24 }
 0x10a   : > { %v334_v30 = vadd.f32 %v324_v25, %v275_v28 }
 0x10c   : > { %v342_v32 = vadd.f32 %v451_v29, %v334_v30 }
 0x10d   : > { %v327_v35 = vpop.f32.mrf.mxu2 }
 0x10e   : > { %v346_v34 = vmax.f32 %v342_v32, 0.0 }
 0x10f   : > { %v277_v36 = vpop.f32.mrf.mxu1  ;;  %v321_v37 = vpop.f32.mrf.mxu0 }
 0x110   : > { %351 = vst.msk [vmem:[%s170_s29 + $0x8] sm:$0xff] %vm349_vm3, %v346_v34  ;;  %v278_v38 = vadd.f32 %v277_v36, %v236_v31  ;;  %v333_v39 = vadd.f32 %v321_v37, %v272_v33 }
 0x112   : > { %v335_v40 = vadd.f32 %v327_v35, %v278_v38  ;;  %v341_v41 = vadd.f32 %v451_v29, %v333_v39 }
 0x114   : > { %v343_v42 = vadd.f32 %v451_v29, %v335_v40  ;;  %v345_v43 = vmax.f32 %v341_v41, 0.0 }
 0x116   : > { %v347_v45 = vmax.f32 %v343_v42, 0.0  ;;  %350 = vst.msk [vmem:[%s170_s29] sm:$0xff] %vm349_vm3, %v345_v43  ;;  %v330_v47 = vpop.f32.mrf.mxu2 }
 0x117   : > { %v280_v46 = vpop.f32.mrf.mxu1 }
 0x118   : > { %352 = vst.msk [vmem:[%s170_s29 + $0x10] sm:$0xff] %vm349_vm3, %v347_v45  ;;  %v281_v48 = vadd.f32 %v280_v46, %v239_v44 }
 0x11a   : > { %v336_v49 = vadd.f32 %v330_v47, %v281_v48 }
 0x11c   : > { %v344_v50 = vadd.f32 %v451_v29, %v336_v49 }
 0x11e   : > { %v348_v51 = vmax.f32 %v344_v50, 0.0 }
 0x120   : > { %353 = vst.msk [vmem:[%s170_s29 + $0x18] sm:$0xff] %vm349_vm3, %v348_v51 }
 0x121 PF: > { %s13_s12 = sadd.s32 1, %s458_s12  }
 0x122   : > { %p10_p4 = scmp.ge.s32.totalorder %s13_s12, 4  }
 0x124   :  { %12 = sbr.rel (!%p10_p4) target bundleno = 1 (0x1), region = 64 }

</bundles_post_ra>
